<compile_context>
chip_gen: v5e
topology: v5e:2x2
jax: 0.10.0
libtpu: 0.0.40
codegen_flags: <defaults>
</compile_context>

<pallas_src>
import functools

import jax
import jax.numpy as jnp
from jax import lax
from jax.experimental import pallas as pl
from jax.experimental.pallas import tpu as pltpu

LN_EPS = 1e-5  # PyTorch nn.LayerNorm default


# --------------------------------------------------------------------------- #
# Kernel
# --------------------------------------------------------------------------- #
def _icm_kernel(
    obs_ref, act_ref, nobs_ref,              # activations, feature-major (feat, TILE_B)
    wt_ref,                                  # trunk Linear weight (rep, obs_dim), bf16
    wf1o_ref, wf1a_ref, wf2_ref,             # forward_net weights (split layer-1)
    wb1o_ref, wb1n_ref, wb2_ref,             # backward_net weights (split layer-1)
    vec_ref,                                 # packed biases / LN params (max_dim, 7) f32
    out_ref,                                 # (2, TILE_B): row0 = fwd err, row1 = bwd err
    *, rep_dim, act_dim, hid_dim,
):
    mm_dtype = wt_ref.dtype

    def mm(w_ref, x):
        # weights stored PyTorch-style (out, in); activations are (in, batch)
        return jnp.dot(w_ref[...], x.astype(mm_dtype),
                       preferred_element_type=jnp.float32)

    # packed small vectors: columns of vec_ref broadcast over lanes
    bt   = vec_ref[:rep_dim, 0:1]
    ln_g = vec_ref[:rep_dim, 1:2]
    ln_b = vec_ref[:rep_dim, 2:3]
    bf1  = vec_ref[:hid_dim, 3:4]
    bf2  = vec_ref[:rep_dim, 4:5]
    bb1  = vec_ref[:hid_dim, 5:6]
    bb2  = vec_ref[:act_dim, 6:7]

    def trunk(x_ref):
        # Linear + LayerNorm (biased var, like PyTorch) + Tanh, all f32 math.
        h = mm(wt_ref, x_ref[...]) + bt                              # (rep, T) f32
        mu = jnp.mean(h, axis=0, keepdims=True)                      # (1, T)
        var = jnp.mean((h - mu) * (h - mu), axis=0, keepdims=True)   # (1, T)
        return jnp.tanh((h - mu) * lax.rsqrt(var + LN_EPS) * ln_g + ln_b)

    obs_r = trunk(obs_ref)                                           # (rep, T) f32
    nobs_r = trunk(nobs_ref)                                         # (rep, T) f32
    act = act_ref[...]                                               # (act_dim, T) f32

    # ---- forward_net(cat([obs_r, action])) as split matmuls ----
    h_f = jnp.maximum(mm(wf1o_ref, obs_r) + mm(wf1a_ref, act) + bf1, 0.0)
    nobs_hat = mm(wf2_ref, h_f) + bf2                                # (rep, T)

    # ---- backward_net(cat([obs_r, nobs_r])) as split matmuls ----
    h_b = jnp.maximum(mm(wb1o_ref, obs_r) + mm(wb1n_ref, nobs_r) + bb1, 0.0)
    act_hat = jnp.tanh(mm(wb2_ref, h_b) + bb2)                       # (act_dim, T)

    # ---- L2 norms over the feature (sublane) axis -> lane-dense (2, T) output ----
    d_f = nobs_r - nobs_hat
    d_b = act - act_hat
    ferr = jnp.sqrt(jnp.sum(d_f * d_f, axis=0, keepdims=True))       # (1, T)
    berr = jnp.sqrt(jnp.sum(d_b * d_b, axis=0, keepdims=True))       # (1, T)
    out_ref[...] = jnp.concatenate([ferr, berr], axis=0)             # (2, T)


# --------------------------------------------------------------------------- #
# Parameter preparation (hoisted out of the per-call hot path)
# --------------------------------------------------------------------------- #
def prepare_params(params, *, matmul_dtype=jnp.bfloat16):
    """Cast weights once to the matmul dtype and pack all tiny per-feature
    vectors (biases / LayerNorm params) as columns of one f32 array."""
    rep_dim = params["wt"].shape[0]
    obs_dim = params["wt"].shape[1]
    hid_dim = params["wf1_o"].shape[0]
    act_dim = params["wb2"].shape[0]

    weights = tuple(jnp.asarray(params[n]).astype(matmul_dtype)
                    for n in ("wt", "wf1_o", "wf1_a", "wf2", "wb1_o", "wb1_n", "wb2"))

    max_dim = max(rep_dim, hid_dim, act_dim)

    def col(name):
        v = jnp.reshape(params[name], (-1,)).astype(jnp.float32)
        return jnp.pad(v, (0, max_dim - v.shape[0]))[:, None]

    vec = jnp.concatenate(
        [col("bt"), col("ln_g"), col("ln_b"), col("bf1"),
         col("bf2"), col("bb1"), col("bb2")], axis=1)                # (max_dim, 7)

    dims = dict(obs_dim=obs_dim, rep_dim=rep_dim, hid_dim=hid_dim, act_dim=act_dim)
    return {"weights": weights, "vec": vec, "dims": dims,
            "matmul_dtype": matmul_dtype}


def _round_up(x, m):
    return ((x + m - 1) // m) * m


def _nbytes(x):
    return int(x.size) * int(jnp.dtype(x.dtype).itemsize)


# --------------------------------------------------------------------------- #
# Forward wrapper
# --------------------------------------------------------------------------- #
def icm_forward(obs, action, next_obs, prepared, *, max_tile_b=4096):
    """obs/action/next_obs are (B, feat) f32; `prepared` comes from
    prepare_params(). Returns (forward_error, backward_error), each (B, 1) f32."""
    assert obs.shape[0] == next_obs.shape[0] == action.shape[0]
    B, obs_dim = obs.shape
    act_dim = action.shape[1]

    dims = prepared["dims"]
    assert obs_dim == dims["obs_dim"] and act_dim == dims["act_dim"]
    rep_dim, hid_dim = dims["rep_dim"], dims["hid_dim"]
    weights, vec = prepared["weights"], prepared["vec"]
    mm_dtype = prepared["matmul_dtype"]

    # ---- trace-time tile selection ----
    # Small batches: one tile covering everything (no padding beyond 128).
    # Larger batches: >=2 steps (v7x megacore) with the biggest tile <= max_tile_b
    # that keeps padding to <128 columns per step.
    b128 = _round_up(B, 128)
    if b128 <= 512 and b128 <= max_tile_b:
        tile_b = b128
    else:
        n_steps = max(2, -(-b128 // max_tile_b))
        tile_b = _round_up(-(-b128 // n_steps), 128)
    b_pad = _round_up(b128, tile_b)

    # ---- activation prep: pad batch, cast, move batch onto the lane axis ----
    def prep(x, dt):
        x = jnp.asarray(x, jnp.float32).astype(dt)
        x = jnp.pad(x, ((0, b_pad - B), (0, 0)))
        return x.T                                                   # (feat, b_pad)

    obs_t = prep(obs, mm_dtype)          # bf16 in HBM (halves read traffic)
    nobs_t = prep(next_obs, mm_dtype)    # bf16 in HBM
    act_t = prep(action, jnp.float32)    # stays f32: feeds the error norm directly

    # ---- specs ----
    act_specs = [
        pl.BlockSpec((obs_dim, tile_b), lambda i: (0, i)),
        pl.BlockSpec((act_dim, tile_b), lambda i: (0, i)),
        pl.BlockSpec((obs_dim, tile_b), lambda i: (0, i)),
    ]
    # weights + packed vectors: full blocks, constant index_map -> resident in VMEM
    resident = lambda a: pl.BlockSpec(a.shape, lambda i: (0, 0))
    weight_specs = [resident(w) for w in weights] + [resident(vec)]

    # ---- VMEM budget derived from the actual tile footprint ----
    in_block_bytes = (2 * obs_dim * tile_b * jnp.dtype(mm_dtype).itemsize
                      + act_dim * tile_b * 4)
    out_block_bytes = 2 * tile_b * 4
    weight_bytes = sum(_nbytes(w) for w in weights) + _nbytes(vec)
    interm_bytes = (4 * rep_dim + 2 * hid_dim + 2 * act_dim + 16) * tile_b * 4
    vmem_limit = int(2 * (in_block_bytes + out_block_bytes)        # double-buffered I/O
                     + 2 * weight_bytes + interm_bytes) + (8 << 20)  # headroom

    # ---- cost estimate: FLOPs drastically understate this mem-bound kernel ----
    flops_per_col = 2 * (2 * rep_dim * obs_dim                       # 2x trunk
                         + hid_dim * (rep_dim + act_dim)             # fwd layer 1
                         + rep_dim * hid_dim                         # fwd layer 2
                         + hid_dim * (2 * rep_dim)                   # bwd layer 1
                         + act_dim * hid_dim)                        # bwd layer 2
    cost = pl.CostEstimate(
        flops=flops_per_col * b_pad,
        transcendentals=(2 * rep_dim + act_dim + 4) * b_pad,
        bytes_accessed=int(_nbytes(obs_t) + _nbytes(nobs_t) + _nbytes(act_t)
                           + 2 * b_pad * 4 + weight_bytes),
    )

    kernel = functools.partial(_icm_kernel, rep_dim=rep_dim,
                               act_dim=act_dim, hid_dim=hid_dim)

    out = pl.pallas_call(
        kernel,
        out_shape=jax.ShapeDtypeStruct((2, b_pad), jnp.float32),
        grid=(b_pad // tile_b,),
        in_specs=act_specs + weight_specs,
        out_specs=pl.BlockSpec((2, tile_b), lambda i: (0, i)),
        compiler_params=pltpu.CompilerParams(
            dimension_semantics=("parallel",),
            vmem_limit_bytes=vmem_limit,
        ),
        cost_estimate=cost,
    )(obs_t, act_t, nobs_t, *weights, vec)

    ferr = out[0, :B, None]                                          # (B, 1)
    berr = out[1, :B, None]
    return ferr, berr


# --------------------------------------------------------------------------- #
# Pure-JAX reference (mirrors the kernel's bf16 matmul cast points)
# --------------------------------------------------------------------------- #
def _jax_reference(obs, action, next_obs, p, matmul_dtype=jnp.bfloat16):
    dt = matmul_dtype

    def mm(x, w):  # x: (B, in), w: (out, in)
        return jnp.dot(x.astype(dt), w.astype(dt).T,
                       preferred_element_type=jnp.float32)

    def trunk(x):
        h = mm(x, p["wt"]) + p["bt"][None, :]
        mu = jnp.mean(h, axis=-1, keepdims=True)
        var = jnp.mean((h - mu) ** 2, axis=-1, keepdims=True)
        hn = (h - mu) * lax.rsqrt(var + LN_EPS)
        return jnp.tanh(hn * p["ln_g"][None, :] + p["ln_b"][None, :])

    o = trunk(obs)
    no = trunk(next_obs)
    hf = jnp.maximum(mm(o, p["wf1_o"]) + mm(action, p["wf1_a"]) + p["bf1"][None, :], 0.0)
    no_hat = mm(hf, p["wf2"]) + p["bf2"][None, :]
    hb = jnp.maximum(mm(o, p["wb1_o"]) + mm(no, p["wb1_n"]) + p["bb1"][None, :], 0.0)
    a_hat = jnp.tanh(mm(hb, p["wb2"]) + p["bb2"][None, :])
    fe = jnp.linalg.norm(no - no_hat, axis=-1, keepdims=True)
    be = jnp.linalg.norm(action - a_hat, axis=-1, keepdims=True)
    return fe, be


# --------------------------------------------------------------------------- #
# Deterministic synthetic parameters (PyTorch (out, in) weight layout)
# --------------------------------------------------------------------------- #
def make_params(key, obs_dim, action_dim, hidden_dim, icm_rep_dim):
    """Init-time only; utils.weight_init is irrelevant to the forward pass."""
    ks = jax.random.split(key, 10)

    def lin_w(k, fan_out, fan_in):
        s = 1.0 / jnp.sqrt(jnp.float32(fan_in))
        return jax.random.normal(k, (fan_out, fan_in), jnp.float32) * s

    def lin_b(k, fan_out, fan_in):
        s = 1.0 / jnp.sqrt(jnp.float32(fan_in))
        return jax.random.uniform(k, (fan_out,), jnp.float32, -s, s)

    wf1 = lin_w(ks[1], hidden_dim, icm_rep_dim + action_dim)
    wb1 = lin_w(ks[3], hidden_dim, 2 * icm_rep_dim)
    return {
        "wt": lin_w(ks[0], icm_rep_dim, obs_dim),
        "bt": lin_b(ks[5], icm_rep_dim, obs_dim),
        "ln_g": jnp.ones((icm_rep_dim,), jnp.float32),   # nn.LayerNorm defaults
        "ln_b": jnp.zeros((icm_rep_dim,), jnp.float32),
        "wf1_o": wf1[:, :icm_rep_dim],
        "wf1_a": wf1[:, icm_rep_dim:],
        "bf1": lin_b(ks[6], hidden_dim, icm_rep_dim + action_dim),
        "wf2": lin_w(ks[2], icm_rep_dim, hidden_dim),
        "bf2": lin_b(ks[7], icm_rep_dim, hidden_dim),
        "wb1_o": wb1[:, :icm_rep_dim],
        "wb1_n": wb1[:, icm_rep_dim:],
        "bb1": lin_b(ks[8], hidden_dim, 2 * icm_rep_dim),
        "wb2": lin_w(ks[4], action_dim, hidden_dim),
        "bb2": lin_b(ks[9], action_dim, hidden_dim),
    }


if __name__ == "__main__":
    obs_dim, action_dim, hidden_dim, icm_rep_dim = 32, 8, 32, 16

    key = jax.random.PRNGKey(0)
    k_params, k_data = jax.random.split(key)
    params = make_params(k_params, obs_dim, action_dim, hidden_dim, icm_rep_dim)

    # Parameter prep hoisted out of the per-call hot path (done once).
    prepared = prepare_params(params)
    jax.block_until_ready(prepared["weights"])

    for B in (8, 400):  # single-tile path and a 2-step "parallel" grid
        k_obs, k_act, k_nobs = jax.random.split(jax.random.fold_in(k_data, B), 3)
        obs = jax.random.normal(k_obs, (B, obs_dim), jnp.float32)
        action = jnp.tanh(jax.random.normal(k_act, (B, action_dim), jnp.float32))
        next_obs = jax.random.normal(k_nobs, (B, obs_dim), jnp.float32)

        fwd_err, bwd_err = icm_forward(obs, action, next_obs, prepared)
        jax.block_until_ready((fwd_err, bwd_err))

        fwd_ref, bwd_ref = _jax_reference(obs, action, next_obs, params)
        assert fwd_err.shape == (B, 1) and bwd_err.shape == (B, 1)
        assert jnp.allclose(fwd_err, fwd_ref, rtol=1e-2, atol=1e-2), \
            float(jnp.max(jnp.abs(fwd_err - fwd_ref)))
        assert jnp.allclose(bwd_err, bwd_ref, rtol=1e-2, atol=1e-2), \
            float(jnp.max(jnp.abs(bwd_err - bwd_ref)))

    print("KERNEL_OK")
</pallas_src>

<mosaic_0001>
module attributes {stable_mosaic.version = 11 : i64} {
  func.func @_icm_kernel(%arg0: i32, %arg1: memref<32x128xbf16, #tpu.memory_space<vmem>>, %arg2: memref<8x128xf32, #tpu.memory_space<vmem>>, %arg3: memref<32x128xbf16, #tpu.memory_space<vmem>>, %arg4: memref<16x32xbf16, #tpu.memory_space<vmem>>, %arg5: memref<32x16xbf16, #tpu.memory_space<vmem>>, %arg6: memref<32x8xbf16, #tpu.memory_space<vmem>>, %arg7: memref<16x32xbf16, #tpu.memory_space<vmem>>, %arg8: memref<32x16xbf16, #tpu.memory_space<vmem>>, %arg9: memref<32x16xbf16, #tpu.memory_space<vmem>>, %arg10: memref<8x32xbf16, #tpu.memory_space<vmem>>, %arg11: memref<32x7xf32, #tpu.memory_space<vmem>>, %arg12: memref<2x128xf32, #tpu.memory_space<vmem>>) attributes {dimension_semantics = [#tpu.dimension_semantics<parallel>], iteration_bounds = array<i64: 1>, scalar_prefetch = 0 : i64, scratch_operands = 0 : i64, tpu.core_type = #tpu.core_type<tc>, window_params = [{transform_indices = @transform_0, window_bounds = array<i64: 32, 128>}, {transform_indices = @transform_1, window_bounds = array<i64: 8, 128>}, {transform_indices = @transform_2, window_bounds = array<i64: 32, 128>}, {pipeline_mode = #tpu.pipeline_mode<synchronous>, transform_indices = @transform_3, window_bounds = array<i64: 16, 32>}, {pipeline_mode = #tpu.pipeline_mode<synchronous>, transform_indices = @transform_4, window_bounds = array<i64: 32, 16>}, {pipeline_mode = #tpu.pipeline_mode<synchronous>, transform_indices = @transform_5, window_bounds = array<i64: 32, 8>}, {pipeline_mode = #tpu.pipeline_mode<synchronous>, transform_indices = @transform_6, window_bounds = array<i64: 16, 32>}, {pipeline_mode = #tpu.pipeline_mode<synchronous>, transform_indices = @transform_7, window_bounds = array<i64: 32, 16>}, {pipeline_mode = #tpu.pipeline_mode<synchronous>, transform_indices = @transform_8, window_bounds = array<i64: 32, 16>}, {pipeline_mode = #tpu.pipeline_mode<synchronous>, transform_indices = @transform_9, window_bounds = array<i64: 8, 32>}, {pipeline_mode = #tpu.pipeline_mode<synchronous>, transform_indices = @transform_10, window_bounds = array<i64: 32, 7>}, {transform_indices = @transform_11, window_bounds = array<i64: 2, 128>}]} {
    %c0 = arith.constant 0 : index
    %c0_0 = arith.constant 0 : index
    %0 = vector.load %arg11[%c0, %c0_0] : memref<32x7xf32, #tpu.memory_space<vmem>>, vector<16x1xf32>
    %c0_1 = arith.constant 0 : index
    %c1 = arith.constant 1 : index
    %1 = vector.load %arg11[%c0_1, %c1] : memref<32x7xf32, #tpu.memory_space<vmem>>, vector<16x1xf32>
    %c0_2 = arith.constant 0 : index
    %c2 = arith.constant 2 : index
    %2 = vector.load %arg11[%c0_2, %c2] : memref<32x7xf32, #tpu.memory_space<vmem>>, vector<16x1xf32>
    %c0_3 = arith.constant 0 : index
    %c3 = arith.constant 3 : index
    %3 = vector.load %arg11[%c0_3, %c3] : memref<32x7xf32, #tpu.memory_space<vmem>>, vector<32x1xf32>
    %c0_4 = arith.constant 0 : index
    %c4 = arith.constant 4 : index
    %4 = vector.load %arg11[%c0_4, %c4] : memref<32x7xf32, #tpu.memory_space<vmem>>, vector<16x1xf32>
    %c0_5 = arith.constant 0 : index
    %c5 = arith.constant 5 : index
    %5 = vector.load %arg11[%c0_5, %c5] : memref<32x7xf32, #tpu.memory_space<vmem>>, vector<32x1xf32>
    %c0_6 = arith.constant 0 : index
    %c6 = arith.constant 6 : index
    %6 = vector.load %arg11[%c0_6, %c6] : memref<32x7xf32, #tpu.memory_space<vmem>>, vector<8x1xf32>
    %c0_7 = arith.constant 0 : index
    %c0_8 = arith.constant 0 : index
    %7 = vector.load %arg1[%c0_7, %c0_8] : memref<32x128xbf16, #tpu.memory_space<vmem>>, vector<32x128xbf16>
    %c0_9 = arith.constant 0 : index
    %c0_10 = arith.constant 0 : index
    %8 = vector.load %arg4[%c0_9, %c0_10] : memref<16x32xbf16, #tpu.memory_space<vmem>>, vector<16x32xbf16>
    %cst = arith.constant dense<0.000000e+00> : vector<16x128xf32>
    %9 = tpu.matmul %8, %7, %cst {dimension_numbers = #tpu.dot_dimension_numbers<[1], [0], [0], [1], [0, 0, 1, 1], [], []>} : vector<16x32xbf16>, vector<32x128xbf16>, vector<16x128xf32> -> vector<16x128xf32>
    %10 = vector.broadcast %0 : vector<16x1xf32> to vector<16x128xf32>
    %11 = arith.addf %9, %10 : vector<16x128xf32>
    %cst_11 = arith.constant dense<0.000000e+00> : vector<128xf32>
    %12 = vector.multi_reduction <add>, %11, %cst_11 [0] : vector<16x128xf32> to vector<128xf32>
    %13 = vector.shape_cast %12 : vector<128xf32> to vector<1x128xf32>
    %cst_12 = arith.constant 1.600000e+01 : f32
    %14 = vector.broadcast %cst_12 : f32 to vector<1x128xf32>
    %15 = arith.divf %13, %14 : vector<1x128xf32>
    %16 = vector.broadcast %15 : vector<1x128xf32> to vector<16x128xf32>
    %17 = arith.subf %11, %16 : vector<16x128xf32>
    %18 = vector.broadcast %15 : vector<1x128xf32> to vector<16x128xf32>
    %19 = arith.subf %11, %18 : vector<16x128xf32>
    %20 = arith.mulf %17, %19 : vector<16x128xf32>
    %cst_13 = arith.constant dense<0.000000e+00> : vector<128xf32>
    %21 = vector.multi_reduction <add>, %20, %cst_13 [0] : vector<16x128xf32> to vector<128xf32>
    %22 = vector.shape_cast %21 : vector<128xf32> to vector<1x128xf32>
    %cst_14 = arith.constant 1.600000e+01 : f32
    %23 = vector.broadcast %cst_14 : f32 to vector<1x128xf32>
    %24 = arith.divf %22, %23 : vector<1x128xf32>
    %25 = vector.broadcast %15 : vector<1x128xf32> to vector<16x128xf32>
    %26 = arith.subf %11, %25 : vector<16x128xf32>
    %cst_15 = arith.constant 9.99999974E-6 : f32
    %27 = vector.broadcast %cst_15 : f32 to vector<1x128xf32>
    %28 = arith.addf %24, %27 : vector<1x128xf32>
    %29 = math.rsqrt %28 : vector<1x128xf32>
    %30 = vector.broadcast %29 : vector<1x128xf32> to vector<16x128xf32>
    %31 = arith.mulf %26, %30 : vector<16x128xf32>
    %32 = vector.broadcast %1 : vector<16x1xf32> to vector<16x128xf32>
    %33 = arith.mulf %31, %32 : vector<16x128xf32>
    %34 = vector.broadcast %2 : vector<16x1xf32> to vector<16x128xf32>
    %35 = arith.addf %33, %34 : vector<16x128xf32>
    %36 = math.tanh %35 : vector<16x128xf32>
    %c0_16 = arith.constant 0 : index
    %c0_17 = arith.constant 0 : index
    %37 = vector.load %arg3[%c0_16, %c0_17] : memref<32x128xbf16, #tpu.memory_space<vmem>>, vector<32x128xbf16>
    %c0_18 = arith.constant 0 : index
    %c0_19 = arith.constant 0 : index
    %38 = vector.load %arg4[%c0_18, %c0_19] : memref<16x32xbf16, #tpu.memory_space<vmem>>, vector<16x32xbf16>
    %cst_20 = arith.constant dense<0.000000e+00> : vector<16x128xf32>
    %39 = tpu.matmul %38, %37, %cst_20 {dimension_numbers = #tpu.dot_dimension_numbers<[1], [0], [0], [1], [0, 0, 1, 1], [], []>} : vector<16x32xbf16>, vector<32x128xbf16>, vector<16x128xf32> -> vector<16x128xf32>
    %40 = vector.broadcast %0 : vector<16x1xf32> to vector<16x128xf32>
    %41 = arith.addf %39, %40 : vector<16x128xf32>
    %cst_21 = arith.constant dense<0.000000e+00> : vector<128xf32>
    %42 = vector.multi_reduction <add>, %41, %cst_21 [0] : vector<16x128xf32> to vector<128xf32>
    %43 = vector.shape_cast %42 : vector<128xf32> to vector<1x128xf32>
    %cst_22 = arith.constant 1.600000e+01 : f32
    %44 = vector.broadcast %cst_22 : f32 to vector<1x128xf32>
    %45 = arith.divf %43, %44 : vector<1x128xf32>
    %46 = vector.broadcast %45 : vector<1x128xf32> to vector<16x128xf32>
    %47 = arith.subf %41, %46 : vector<16x128xf32>
    %48 = vector.broadcast %45 : vector<1x128xf32> to vector<16x128xf32>
    %49 = arith.subf %41, %48 : vector<16x128xf32>
    %50 = arith.mulf %47, %49 : vector<16x128xf32>
    %cst_23 = arith.constant dense<0.000000e+00> : vector<128xf32>
    %51 = vector.multi_reduction <add>, %50, %cst_23 [0] : vector<16x128xf32> to vector<128xf32>
    %52 = vector.shape_cast %51 : vector<128xf32> to vector<1x128xf32>
    %cst_24 = arith.constant 1.600000e+01 : f32
    %53 = vector.broadcast %cst_24 : f32 to vector<1x128xf32>
    %54 = arith.divf %52, %53 : vector<1x128xf32>
    %55 = vector.broadcast %45 : vector<1x128xf32> to vector<16x128xf32>
    %56 = arith.subf %41, %55 : vector<16x128xf32>
    %cst_25 = arith.constant 9.99999974E-6 : f32
    %57 = vector.broadcast %cst_25 : f32 to vector<1x128xf32>
    %58 = arith.addf %54, %57 : vector<1x128xf32>
    %59 = math.rsqrt %58 : vector<1x128xf32>
    %60 = vector.broadcast %59 : vector<1x128xf32> to vector<16x128xf32>
    %61 = arith.mulf %56, %60 : vector<16x128xf32>
    %62 = vector.broadcast %1 : vector<16x1xf32> to vector<16x128xf32>
    %63 = arith.mulf %61, %62 : vector<16x128xf32>
    %64 = vector.broadcast %2 : vector<16x1xf32> to vector<16x128xf32>
    %65 = arith.addf %63, %64 : vector<16x128xf32>
    %66 = math.tanh %65 : vector<16x128xf32>
    %c0_26 = arith.constant 0 : index
    %c0_27 = arith.constant 0 : index
    %67 = vector.load %arg2[%c0_26, %c0_27] : memref<8x128xf32, #tpu.memory_space<vmem>>, vector<8x128xf32>
    %c0_28 = arith.constant 0 : index
    %c0_29 = arith.constant 0 : index
    %68 = vector.load %arg5[%c0_28, %c0_29] : memref<32x16xbf16, #tpu.memory_space<vmem>>, vector<32x16xbf16>
    %69 = arith.truncf %36 : vector<16x128xf32> to vector<16x128xbf16>
    %cst_30 = arith.constant dense<0.000000e+00> : vector<32x128xf32>
    %70 = tpu.matmul %68, %69, %cst_30 {dimension_numbers = #tpu.dot_dimension_numbers<[1], [0], [0], [1], [0, 0, 1, 1], [], []>} : vector<32x16xbf16>, vector<16x128xbf16>, vector<32x128xf32> -> vector<32x128xf32>
    %c0_31 = arith.constant 0 : index
    %c0_32 = arith.constant 0 : index
    %71 = vector.load %arg6[%c0_31, %c0_32] : memref<32x8xbf16, #tpu.memory_space<vmem>>, vector<32x8xbf16>
    %72 = arith.truncf %67 : vector<8x128xf32> to vector<8x128xbf16>
    %cst_33 = arith.constant dense<0.000000e+00> : vector<32x128xf32>
    %73 = tpu.matmul %71, %72, %cst_33 {dimension_numbers = #tpu.dot_dimension_numbers<[1], [0], [0], [1], [0, 0, 1, 1], [], []>} : vector<32x8xbf16>, vector<8x128xbf16>, vector<32x128xf32> -> vector<32x128xf32>
    %74 = arith.addf %70, %73 : vector<32x128xf32>
    %75 = vector.broadcast %3 : vector<32x1xf32> to vector<32x128xf32>
    %76 = arith.addf %74, %75 : vector<32x128xf32>
    %cst_34 = arith.constant 0.000000e+00 : f32
    %77 = vector.broadcast %cst_34 : f32 to vector<32x128xf32>
    %78 = arith.maximumf %76, %77 : vector<32x128xf32>
    %c0_35 = arith.constant 0 : index
    %c0_36 = arith.constant 0 : index
    %79 = vector.load %arg7[%c0_35, %c0_36] : memref<16x32xbf16, #tpu.memory_space<vmem>>, vector<16x32xbf16>
    %80 = arith.truncf %78 : vector<32x128xf32> to vector<32x128xbf16>
    %cst_37 = arith.constant dense<0.000000e+00> : vector<16x128xf32>
    %81 = tpu.matmul %79, %80, %cst_37 {dimension_numbers = #tpu.dot_dimension_numbers<[1], [0], [0], [1], [0, 0, 1, 1], [], []>} : vector<16x32xbf16>, vector<32x128xbf16>, vector<16x128xf32> -> vector<16x128xf32>
    %82 = vector.broadcast %4 : vector<16x1xf32> to vector<16x128xf32>
    %83 = arith.addf %81, %82 : vector<16x128xf32>
    %c0_38 = arith.constant 0 : index
    %c0_39 = arith.constant 0 : index
    %84 = vector.load %arg8[%c0_38, %c0_39] : memref<32x16xbf16, #tpu.memory_space<vmem>>, vector<32x16xbf16>
    %85 = arith.truncf %36 : vector<16x128xf32> to vector<16x128xbf16>
    %cst_40 = arith.constant dense<0.000000e+00> : vector<32x128xf32>
    %86 = tpu.matmul %84, %85, %cst_40 {dimension_numbers = #tpu.dot_dimension_numbers<[1], [0], [0], [1], [0, 0, 1, 1], [], []>} : vector<32x16xbf16>, vector<16x128xbf16>, vector<32x128xf32> -> vector<32x128xf32>
    %c0_41 = arith.constant 0 : index
    %c0_42 = arith.constant 0 : index
    %87 = vector.load %arg9[%c0_41, %c0_42] : memref<32x16xbf16, #tpu.memory_space<vmem>>, vector<32x16xbf16>
    %88 = arith.truncf %66 : vector<16x128xf32> to vector<16x128xbf16>
    %cst_43 = arith.constant dense<0.000000e+00> : vector<32x128xf32>
    %89 = tpu.matmul %87, %88, %cst_43 {dimension_numbers = #tpu.dot_dimension_numbers<[1], [0], [0], [1], [0, 0, 1, 1], [], []>} : vector<32x16xbf16>, vector<16x128xbf16>, vector<32x128xf32> -> vector<32x128xf32>
    %90 = arith.addf %86, %89 : vector<32x128xf32>
    %91 = vector.broadcast %5 : vector<32x1xf32> to vector<32x128xf32>
    %92 = arith.addf %90, %91 : vector<32x128xf32>
    %cst_44 = arith.constant 0.000000e+00 : f32
    %93 = vector.broadcast %cst_44 : f32 to vector<32x128xf32>
    %94 = arith.maximumf %92, %93 : vector<32x128xf32>
    %c0_45 = arith.constant 0 : index
    %c0_46 = arith.constant 0 : index
    %95 = vector.load %arg10[%c0_45, %c0_46] : memref<8x32xbf16, #tpu.memory_space<vmem>>, vector<8x32xbf16>
    %96 = arith.truncf %94 : vector<32x128xf32> to vector<32x128xbf16>
    %cst_47 = arith.constant dense<0.000000e+00> : vector<8x128xf32>
    %97 = tpu.matmul %95, %96, %cst_47 {dimension_numbers = #tpu.dot_dimension_numbers<[1], [0], [0], [1], [0, 0, 1, 1], [], []>} : vector<8x32xbf16>, vector<32x128xbf16>, vector<8x128xf32> -> vector<8x128xf32>
    %98 = vector.broadcast %6 : vector<8x1xf32> to vector<8x128xf32>
    %99 = arith.addf %97, %98 : vector<8x128xf32>
    %100 = math.tanh %99 : vector<8x128xf32>
    %101 = arith.subf %66, %83 : vector<16x128xf32>
    %102 = arith.subf %67, %100 : vector<8x128xf32>
    %103 = arith.mulf %101, %101 : vector<16x128xf32>
    %cst_48 = arith.constant dense<0.000000e+00> : vector<128xf32>
    %104 = vector.multi_reduction <add>, %103, %cst_48 [0] : vector<16x128xf32> to vector<128xf32>
    %105 = vector.shape_cast %104 : vector<128xf32> to vector<1x128xf32>
    %106 = math.sqrt %105 : vector<1x128xf32>
    %107 = arith.mulf %102, %102 : vector<8x128xf32>
    %cst_49 = arith.constant dense<0.000000e+00> : vector<128xf32>
    %108 = vector.multi_reduction <add>, %107, %cst_49 [0] : vector<8x128xf32> to vector<128xf32>
    %109 = vector.shape_cast %108 : vector<128xf32> to vector<1x128xf32>
    %110 = math.sqrt %109 : vector<1x128xf32>
    %111 = tpu.concatenate %106, %110 in 0 : vector<1x128xf32>, vector<1x128xf32> -> vector<2x128xf32>
    %c0_50 = arith.constant 0 : index
    %c0_51 = arith.constant 0 : index
    %112 = vector.load %arg12[%c0_50, %c0_51] : memref<2x128xf32, #tpu.memory_space<vmem>>, vector<2x128xf32>
    tpu.vector_store %arg12[%c0_50, %c0_51], %111 {strides = array<i32>} : memref<2x128xf32, #tpu.memory_space<vmem>>, vector<2x128xf32>,
    return
  }
  func.func @transform_0(%arg0: i32) -> (i32, i32) {
    %c0_i32 = arith.constant 0 : i32
    %c0_i32_0 = arith.constant 0 : i32
    return %c0_i32, %arg0 : i32, i32
  }
  func.func @transform_1(%arg0: i32) -> (i32, i32) {
    %c0_i32 = arith.constant 0 : i32
    %c0_i32_0 = arith.constant 0 : i32
    return %c0_i32, %arg0 : i32, i32
  }
  func.func @transform_2(%arg0: i32) -> (i32, i32) {
    %c0_i32 = arith.constant 0 : i32
    %c0_i32_0 = arith.constant 0 : i32
    return %c0_i32, %arg0 : i32, i32
  }
  func.func @transform_3(%arg0: i32) -> (i32, i32) {
    %c0_i32 = arith.constant 0 : i32
    %c0_i32_0 = arith.constant 0 : i32
    %c0_i32_1 = arith.constant 0 : i32
    return %c0_i32, %c0_i32_0 : i32, i32
  }
  func.func @transform_4(%arg0: i32) -> (i32, i32) {
    %c0_i32 = arith.constant 0 : i32
    %c0_i32_0 = arith.constant 0 : i32
    %c0_i32_1 = arith.constant 0 : i32
    return %c0_i32, %c0_i32_0 : i32, i32
  }
  func.func @transform_5(%arg0: i32) -> (i32, i32) {
    %c0_i32 = arith.constant 0 : i32
    %c0_i32_0 = arith.constant 0 : i32
    %c0_i32_1 = arith.constant 0 : i32
    return %c0_i32, %c0_i32_0 : i32, i32
  }
  func.func @transform_6(%arg0: i32) -> (i32, i32) {
    %c0_i32 = arith.constant 0 : i32
    %c0_i32_0 = arith.constant 0 : i32
    %c0_i32_1 = arith.constant 0 : i32
    return %c0_i32, %c0_i32_0 : i32, i32
  }
  func.func @transform_7(%arg0: i32) -> (i32, i32) {
    %c0_i32 = arith.constant 0 : i32
    %c0_i32_0 = arith.constant 0 : i32
    %c0_i32_1 = arith.constant 0 : i32
    return %c0_i32, %c0_i32_0 : i32, i32
  }
  func.func @transform_8(%arg0: i32) -> (i32, i32) {
    %c0_i32 = arith.constant 0 : i32
    %c0_i32_0 = arith.constant 0 : i32
    %c0_i32_1 = arith.constant 0 : i32
    return %c0_i32, %c0_i32_0 : i32, i32
  }
  func.func @transform_9(%arg0: i32) -> (i32, i32) {
    %c0_i32 = arith.constant 0 : i32
    %c0_i32_0 = arith.constant 0 : i32
    %c0_i32_1 = arith.constant 0 : i32
    return %c0_i32, %c0_i32_0 : i32, i32
  }
  func.func @transform_10(%arg0: i32) -> (i32, i32) {
    %c0_i32 = arith.constant 0 : i32
    %c0_i32_0 = arith.constant 0 : i32
    %c0_i32_1 = arith.constant 0 : i32
    return %c0_i32, %c0_i32_0 : i32, i32
  }
  func.func @transform_11(%arg0: i32) -> (i32, i32) {
    %c0_i32 = arith.constant 0 : i32
    %c0_i32_0 = arith.constant 0 : i32
    return %c0_i32, %arg0 : i32, i32
  }
}

</mosaic_0001>

<bundles_post_ra>
// kernel: tpu_custom_call.1
= control target key start
LH: loop header
LB: loop body
LE: loop exit
PB: predicated region body
PF: predicated region fallthrough
CT: control target
= control target key end

     0   :  { %v712_v2 = vmov 0   ;;  %v713_v4 = vmov 1   ;;  %s890_s0 = inlined_call_operand.vmem [shape: bf16[32,128], index: 0, kind: input, shape index: {}]   ;;  %s891_s1 = inlined_call_operand.vmem [shape: f32[8,128], index: 1, kind: input, shape index: {}]   ;;  %s892_s2 = inlined_call_operand.vmem [shape: bf16[32,128], index: 2, kind: input, shape index: {}]   ;;  %s893_s3 = inlined_call_operand.vmem [shape: bf16[16,32], index: 3, kind: input, shape index: {}]   ;;  %s894_s4 = inlined_call_operand.vmem [shape: bf16[32,16], index: 4, kind: input, shape index: {}]   ;;  %s895_s5 = inlined_call_operand.vmem [shape: bf16[32,8], index: 5, kind: input, shape index: {}]   ;;  %s896_s6 = inlined_call_operand.vmem [shape: bf16[16,32], index: 6, kind: input, shape index: {}]   ;;  %s897_s7 = inlined_call_operand.vmem [shape: bf16[32,16], index: 7, kind: input, shape index: {}]   ;;  %s898_s8 = inlined_call_operand.vmem [shape: bf16[32,16], index: 8, kind: input, shape index: {}]   ;;  %s899_s9 = inlined_call_operand.vmem [shape: bf16[8,32], index: 9, kind: input, shape index: {}]   ;;  %s900_s10 = inlined_call_operand.vmem [shape: f32[32,7], index: 10, kind: input, shape index: {}]   ;;  %s901_s11 = inlined_call_operand.hbm [shape: f32[2,128], index: 11, kind: output, shape index: {}]  }
   0x1   :  { %v631_v0 = vld [vmem:[%s890_s0 + $0x8] sm:$0xff]  ;;  %654 = vset.pattern.permute.xlu0 %v712_v2  ;;  %v790_v3 = vld [vmem:[%s900_s10] sm:$0xff]  ;;  %655 = vset.pattern.permute.xlu1 %v713_v4 }
   0x2   :  { %v634_v1 = vld [vmem:[%s892_s2 + $0x8] sm:$0xff]  ;;  %87 = vmatpush.bf16.msra.mxu0 %v631_v0  ;;  %v630_v5 = vld [vmem:[%s890_s0] sm:$0xff] }
   0x3   :  { %179 = vmatpush.bf16.msra.mxu1 %v634_v1  ;;  %v633_v6 = vld [vmem:[%s892_s2] sm:$0xff] }
   0x4   :  { %16 = vsyncpa [#allocation3], 0  ;;  %52 = vperm.xlu0 %654, %v790_v3   ;;  %136 = vperm.xlu1 %655, %v790_v3   ;;  %v714_v7 = vmov 2   ;;  %v632_v8 = vld [vmem:[%s893_s3] sm:$0xff]  ;;  %vm77_vm0 = vcmask 261120   ;;  %v807_v9 = vld [vmem:[%s900_s10 + $0x8] sm:$0xff] }
   0x5   :  { %656 = vset.pattern.permute.xlu2 %v714_v7  ;;  %v715_v11 = vmov 16.0   ;;  %v817_v41 = vld [vmem:[%s891_s1] sm:$0xff]  ;;  %vm254_vm2 = vcmask 1043456   ;;  %v638_v50 = vld [vmem:[%s895_s5 + $0x8] sm:$0xff]  ;;  %vm247_vm3 = vcmask 64512   ;;  %vm287_vm10 = vcmask 130048  }
   0x6   :  { %146 = vperm.xlu2 %656, %v790_v3   ;;  %88 = vmatpush.bf16.msra.mxu0 %v630_v5  ;;  %666 = vrcp.f32 %v715_v11  ;;  %v236_v42 = vpack.c.bf16 %v817_v41, %v817_v41  ;;  %s553_s2 = sshll.u32 %s901_s11, 4  ;;  %vm543_vm13 = vcmask 1040384   ;;  %s554_s2 = int_to_ptr.hbm [resolvable:$true] %s553_s2 }
   0x7   :  { %180 = vmatpush.bf16.msra.mxu1 %v633_v6 }
   0x8   :  { %v256_v45 = vsel %vm254_vm2, %v236_v42, 0 }
   0x9   :  { %574 = vmatmul.msk.bf16.vlgmr.msra.gmra.mxu0 %vm77_vm0, %v632_v8  ;;  %644 = vmatpush.bf16.msra.mxu2 %v256_v45 }
   0xa   :  { %583 = vmatmul.msk.bf16.vlgmr.msra.gmra.mxu1 %vm77_vm0, %v632_v8  ;;  %265 = vmatpush.bf16.msrb.mxu0 %v256_v45 }
   0xc   :  { %57 = vperm.xlu0 %654, %v807_v9   ;;  %140 = vperm.xlu1 %655, %v807_v9   ;;  %v667_v14 = vpop.eup %666 }
   0xd   :  { %v103_v15 = vmul.f32 16.0, %v667_v14  ;;  %vm107_vm1 = vweird.f32 %v667_v14  ;;  %593 = vmatmul.msk.bf16.vlgmr.msra.gmra.mxu2 %vm247_vm3, %v638_v50 }
   0xe   :  { %150 = vperm.xlu2 %656, %v807_v9  }
   0xf   :  { %v104_v23 = vsub.f32 1.0, %v103_v15 }
  0x11   :  { %v105_v28 = vmul.f32 %v667_v14, %v104_v23 }
  0x13   :  { %v106_v33 = vadd.f32 %v667_v14, %v105_v28 }
  0x15   :  { %v108_v38 = vsel %vm107_vm1, %v667_v14, %v106_v33 }
  0x76   :  { %v53_v10 = vpop.permute.xlu0 %52  ;;  %v137_v15 = vpop.permute.xlu1 %136 }
  0x7e   :  { %v58_v16 = vpop.permute.xlu0 %57  ;;  %v141_v33 = vpop.permute.xlu1 %140 }
  0x86   :  { %v90_v12 = vpop.f32.mrf.mxu0 }
  0x87   :  { %v182_v13 = vpop.f32.mrf.mxu1  ;;  %v91_v19 = vadd.f32 %v90_v12, %v53_v10 }
  0x88   :  { %v183_v20 = vadd.f32 %v182_v13, %v53_v10 }
  0x8e   :  { %v92_v17 = vpop.f32.mrf.mxu0 }
  0x8f   :  { %v184_v18 = vpop.f32.mrf.mxu1  ;;  %v93_v21 = vadd.f32 %v92_v17, %v58_v16 }
  0x90   :  { %v185_v22 = vadd.f32 %v184_v18, %v58_v16 }
  0x91   :  { %v95_v24 = vadd.f32 %v93_v21, %v91_v19 }
  0x92   :  { %v187_v25 = vadd.f32 %v185_v22, %v183_v20 }
  0x93   :  { %v96_v26 = vrot.slane %v95_v24, 4 }
  0x94   :  { %v188_v27 = vrot.slane %v187_v25, 4 }
  0x95   :  { %v97_v29 = vadd.f32 %v96_v26, %v95_v24 }
  0x96   :  { %v189_v30 = vadd.f32 %v188_v27, %v187_v25 }
  0x97   :  { %v98_v31 = vrot.slane %v97_v29, 2 }
  0x98   :  { %v190_v32 = vrot.slane %v189_v30, 2 }
  0x99   :  { %v99_v34 = vadd.f32 %v98_v31, %v97_v29 }
  0x9a   :  { %v191_v35 = vadd.f32 %v190_v32, %v189_v30 }
  0x9b   :  { %v100_v36 = vrot.slane %v99_v34, 1 }
  0x9c   :  { %v192_v37 = vrot.slane %v191_v35, 1 }
  0x9d   :  { %v101_v39 = vadd.f32 %v100_v36, %v99_v34 }
  0x9e   :  { %v193_v40 = vadd.f32 %v192_v37, %v191_v35  ;;  %v717_v37 = vmov 3  }
  0x9f   :  { %v109_v43 = vmul.f32 %v108_v38, %v101_v39  ;;  %659 = vset.pattern.permute.xlu2 %v717_v37 }
  0xa0   :  { %v194_v44 = vmul.f32 %v193_v40, %v108_v38 }
  0xa1   :  { %v821_v46 = vsub.f32 %v93_v21, %v109_v43  ;;  %v110_v48 = vsub.f32 %v91_v19, %v109_v43  ;;  %v147_v19 = vpop.permute.xlu2 %146  ;;  %v716_v21 = vmov 5  }
  0xa2   :  { %v823_v47 = vsub.f32 %v185_v22, %v194_v44  ;;  %v195_v49 = vsub.f32 %v183_v20, %v194_v44  ;;  %v637_v20 = vld [vmem:[%s895_s5] sm:$0xff]  ;;  %657 = vset.pattern.permute.xlu0 %v716_v21  ;;  %658 = vset.pattern.permute.xlu1 %v716_v21  ;;  %v43_v22 = vld [vmem:[%s900_s10 + $0x18] sm:$0xff] }
  0xa3   :  { %v113_v51 = vmul.f32 %v821_v46, %v821_v46  ;;  %v112_v53 = vmul.f32 %v110_v48, %v110_v48  ;;  %465 = vperm.xlu1 %658, %v43_v22   ;;  %592 = vmatmul.msk.bf16.vlgmr.msrb.gmra.mxu0 %vm247_vm3, %v637_v20 }
  0xa4   :  { %v198_v52 = vmul.f32 %v823_v47, %v823_v47  ;;  %v197_v54 = vmul.f32 %v195_v49, %v195_v49 }
  0xa5   :  { %v114_v55 = vadd.f32 %v113_v51, %v112_v53  ;;  %v635_v53 = vld [vmem:[%s894_s4] sm:$0xff] }
  0xa6   :  { %v199_v56 = vadd.f32 %v198_v52, %v197_v54  ;;  %v640_v54 = vld [vmem:[%s897_s7] sm:$0xff] }
  0xa7   :  { %v115_v57 = vrot.slane %v114_v55, 4 }
  0xa8   :  { %v200_v58 = vrot.slane %v199_v56, 4 }
  0xa9   :  { %v116_v59 = vadd.f32 %v115_v57, %v114_v55  ;;  %v151_v40 = vpop.permute.xlu2 %150  ;;  %v642_v55 = vld [vmem:[%s898_s8] sm:$0xff]  ;;  %v641_v57 = vld [vmem:[%s897_s7 + $0x8] sm:$0xff] }
  0xaa   :  { %v201_v60 = vadd.f32 %v200_v58, %v199_v56  ;;  %v636_v56 = vld [vmem:[%s894_s4 + $0x8] sm:$0xff] }
  0xab   :  { %v117_v61 = vrot.slane %v116_v59, 2  ;;  %660 = vset.pattern.permute.xlu1 %v717_v37  ;;  %v643_v58 = vld [vmem:[%s898_s8 + $0x8] sm:$0xff] }
  0xac   :  { %v202_v62 = vrot.slane %v201_v60, 2  ;;  %328 = vperm.xlu1 %660, %v43_v22  }
  0xad   :  { %v118_v63 = vadd.f32 %v117_v61, %v116_v59  ;;  %v272_v59 = vpop.f32.mrf.mxu2 }
  0xae   :  { %v203_v0 = vadd.f32 %v202_v62, %v201_v60 }
  0xaf   :  { %v119_v1 = vrot.slane %v118_v63, 1 }
  0xb0   :  { %v204_v2 = vrot.slane %v203_v0, 1 }
  0xb1   :  { %v120_v4 = vadd.f32 %v119_v1, %v118_v63 }
  0xb2   :  { %v205_v5 = vadd.f32 %v204_v2, %v203_v0 }
  0xb3   :  { %v121_v6 = vmul.f32 %v120_v4, %v108_v38 }
  0xb4   :  { %v206_v7 = vmul.f32 %v205_v5, %v108_v38  ;;  %314 = vperm.xlu1 %660, %v790_v3  }
  0xb5   :  { %v122_v8 = vadd.f32 1e-05, %v121_v6  ;;  %v274_v60 = vpop.f32.mrf.mxu2  ;;  %v718_v6 = vmov 4  }
  0xb6   :  { %v207_v10 = vadd.f32 1e-05, %v206_v7  ;;  %v719_v7 = vmov 6  }
  0xb7   :  { %668 = vrsqrt.f32 %v122_v8  ;;  %vm129_vm6 = vweird.f32 %v122_v8 }
  0xb8   :  { %670 = vrsqrt.f32 %v207_v10  ;;  %vm214_vm8 = vweird.f32 %v207_v10 }
  0xbc   :  { %664 = vset.pattern.permute.xlu1 %v718_v6 }
  0xbd   :  { %v669_v11 = vpop.eup %668  ;;  %344 = vperm.xlu1 %664, %v790_v3  }
  0xbe   :  { %v671_v12 = vpop.eup %670  ;;  %v124_v13 = vmul.f32 %v669_v11, %v122_v8  ;;  %vm130_vm4 = vweird.f32 %v669_v11 }
  0xbf   :  { %v209_v14 = vmul.f32 %v671_v12, %v207_v10  ;;  %vm215_vm5 = vweird.f32 %v671_v12  ;;  %vm131_vm7 = vmor %vm129_vm6, %vm130_vm4 }
  0xc0   :  { %v125_v16 = vmul.f32 %v669_v11, %v124_v13  ;;  %vm216_vm9 = vmor %vm214_vm8, %vm215_vm5 }
  0xc1   :  { %v210_v17 = vmul.f32 %v671_v12, %v209_v14 }
  0xc2   :  { %v126_v18 = vmul.f32 0.5, %v125_v16 }
  0xc3   :  { %v211_v23 = vmul.f32 0.5, %v210_v17 }
  0xc4   :  { %v127_v24 = vsub.f32 1.5, %v126_v18 }
  0xc5   :  { %v212_v25 = vsub.f32 1.5, %v211_v23 }
  0xc6   :  { %v128_v26 = vmul.f32 %v669_v11, %v127_v24 }
  0xc7   :  { %v213_v27 = vmul.f32 %v671_v12, %v212_v25 }
  0xc8   :  { %v132_v28 = vsel %vm131_vm7, %v669_v11, %v128_v26 }
  0xc9   :  { %v133_v29 = vmul.f32 %v132_v28, %v110_v48  ;;  %v217_v30 = vsel %vm216_vm9, %v671_v12, %v213_v27  ;;  %v134_v31 = vmul.f32 %v132_v28, %v821_v46  ;;  %v42_v46 = vld [vmem:[%s900_s10 + $0x10] sm:$0xff] }
  0xca   :  { %v218_v32 = vmul.f32 %v217_v30, %v195_v49  ;;  %v219_v34 = vmul.f32 %v217_v30, %v823_v47  ;;  %461 = vperm.xlu0 %657, %v42_v46   ;;  %323 = vperm.xlu2 %659, %v42_v46  }
  0xcb   :  { %v143_v35 = vmul.f32 %v137_v15, %v133_v29  ;;  %v144_v36 = vmul.f32 %v141_v33, %v134_v31 }
  0xcc   :  { %v220_v38 = vmul.f32 %v218_v32, %v137_v15  ;;  %v221_v39 = vmul.f32 %v219_v34, %v141_v33 }
  0xcd   :  { %v153_v42 = vadd.f32 %v147_v19, %v143_v35  ;;  %v154_v43 = vadd.f32 %v151_v40, %v144_v36 }
  0xce   :  { %v222_v44 = vadd.f32 %v220_v38, %v147_v19  ;;  %v223_v45 = vadd.f32 %v221_v39, %v151_v40 }
  0xcf   :  { %672 = vtanh.f32 %v153_v42 }
  0xd0   :  { %674 = vtanh.f32 %v222_v44 }
  0xd1   :  { %676 = vtanh.f32 %v154_v43 }
  0xd2   :  { %678 = vtanh.f32 %v223_v45  ;;  %457 = vperm.xlu0 %657, %v807_v9   ;;  %661 = vset.pattern.permute.xlu2 %v716_v21 }
  0xd3   :  { %453 = vperm.xlu2 %661, %v790_v3  }
  0xd5   :  { %v673_v47 = vpop.eup %672 }
  0xd6   :  { %v846_v48 = vpop.eup %674 }
  0xd7   :  { %v677_v49 = vpop.eup %676 }
  0xd8   :  { %v849_v50 = vpop.eup %678  ;;  %v231_v51 = vpack.c.bf16 %v677_v49, %v673_v47 }
  0xd9   :  { %v381_v52 = vpack.c.bf16 %v849_v50, %v846_v48 }
  0xda   :  { %301 = vmatpush.bf16.msra.mxu3 %v231_v51  ;;  %440 = vmatpush.bf16.msrb.mxu2 %v231_v51 }
  0xdb   :  { %405 = vmatpush.bf16.msrb.mxu1 %v381_v52  ;;  %662 = vset.pattern.permute.xlu2 %v717_v37  ;;  %v639_v52 = vld [vmem:[%s896_s6] sm:$0xff]  ;;  %s720_s6 = smov [#allocation2]  }
  0xdc   :  { %318 = vperm.xlu2 %662, %v807_v9   ;;  %663 = vset.pattern.permute.xlu0 %v719_v7 }
  0xdd   :  { %602 = vmatmul.msk.bf16.vlgmr.msra.gmra.mxu3 %vm287_vm10, %v635_v53  ;;  %627 = vmatmul.msk.bf16.vlgmr.msrb.gmra.mxu2 %vm287_vm10, %v640_v54  ;;  %v476_v53 = vld [vmem:[%s899_s9] sm:$0xf]  ;;  %s551_s9 = sshll.u32 %s720_s6, 4  ;;  %s552_s9 = int_to_ptr.vmem [resolvable:$true] %s551_s9 }
  0xde   :  { %617 = vmatmul.msk.bf16.vlgmr.msrb.gmra.mxu1 %vm287_vm10, %v642_v55  ;;  %480 = vperm.xlu0 %663, %v790_v3  }
  0xe4   :  { %665 = vset.pattern.permute.xlu2 %v718_v6 }
  0xe5   :  { %348 = vperm.xlu2 %665, %v807_v9  }
  0xed   :  { %603 = vmatmul.msk.bf16.gmra.mxu3 %vm287_vm10, %v636_v56  ;;  %628 = vmatmul.msk.bf16.gmra.mxu2 %vm287_vm10, %v641_v57 }
  0xee   :  { %618 = vmatmul.msk.bf16.gmra.mxu1 %vm287_vm10, %v643_v58 }
 0x115   :  { %v466_v2 = vpop.permute.xlu1 %465 }
 0x11e   :  { %v329_v13 = vpop.permute.xlu1 %328 }
 0x120   :  { %v267_v8 = vpop.f32.mrf.mxu0 }
 0x124   :  { %v324_v0 = vpop.permute.xlu2 %323 }
 0x126   :  { %v315_v9 = vpop.permute.xlu1 %314 }
 0x128   :  { %v269_v16 = vpop.f32.mrf.mxu0 }
 0x12d   :  { %v454_v11 = vpop.permute.xlu2 %453 }
 0x12f   :  { %v345_v55 = vpop.permute.xlu1 %344 }
 0x136   :  { %v319_v23 = vpop.permute.xlu2 %318 }
 0x13c   :  { %v462_v10 = vpop.permute.xlu0 %461 }
 0x144   :  { %v458_v19 = vpop.permute.xlu0 %457 }
 0x150   :  { %v481_v56 = vpop.permute.xlu0 %480 }
 0x15b   :  { %v407_v61 = vpop.f32.mrf.mxu1 }
 0x160   :  { %v303_v62 = vpop.f32.mrf.mxu3  ;;  %v442_v63 = vpop.f32.mrf.mxu2 }
 0x161   :  { %v443_v24 = vadd.f32 %v442_v63, %v407_v61  ;;  %v304_v25 = vadd.f32 %v303_v62, %v267_v8 }
 0x163   :  { %v409_v1 = vpop.f32.mrf.mxu1  ;;  %v468_v35 = vadd.f32 %v454_v11, %v443_v24  ;;  %v331_v36 = vadd.f32 %v315_v9, %v304_v25 }
 0x165   :  { %v472_v46 = vmax.f32 %v468_v35, 0.0  ;;  %v335_v47 = vmax.f32 %v331_v36, 0.0 }
 0x168   :  { %v305_v4 = vpop.f32.mrf.mxu3  ;;  %v444_v5 = vpop.f32.mrf.mxu2 }
 0x169   :  { %v445_v20 = vadd.f32 %v444_v5, %v409_v1  ;;  %v306_v22 = vadd.f32 %v305_v4, %v269_v16 }
 0x16b   :  { %v412_v12 = vpop.f32.mrf.mxu1  ;;  %v469_v31 = vadd.f32 %v458_v19, %v445_v20  ;;  %v332_v32 = vadd.f32 %v319_v23, %v306_v22 }
 0x16d   :  { %v473_v42 = vmax.f32 %v469_v31, 0.0  ;;  %v336_v43 = vmax.f32 %v332_v32, 0.0 }
 0x16f   :  { %v341_v49 = vpack.c.bf16 %v336_v43, %v335_v47  ;;  %v477_v51 = vpack.c.bf16 %v473_v42, %v472_v46 }
 0x170   :  { %v308_v14 = vpop.f32.mrf.mxu3  ;;  %v447_v15 = vpop.f32.mrf.mxu2 }
 0x171   :  { %v309_v17 = vadd.f32 %v308_v14, %v272_v59  ;;  %v448_v18 = vadd.f32 %v447_v15, %v412_v12  ;;  %v349_v59 = vpop.permute.xlu2 %348 }
 0x173   :  { %v414_v21 = vpop.f32.mrf.mxu1  ;;  %v333_v27 = vadd.f32 %v324_v0, %v309_v17  ;;  %v470_v28 = vadd.f32 %v462_v10, %v448_v18 }
 0x175   :  { %v337_v37 = vmax.f32 %v333_v27, 0.0  ;;  %v474_v38 = vmax.f32 %v470_v28, 0.0 }
 0x178   :  { %v310_v3 = vpop.f32.mrf.mxu3  ;;  %v449_v26 = vpop.f32.mrf.mxu2 }
 0x179   :  { %v311_v29 = vadd.f32 %v310_v3, %v274_v60  ;;  %v450_v30 = vadd.f32 %v449_v26, %v414_v21 }
 0x17b   :  { %v334_v33 = vadd.f32 %v329_v13, %v311_v29  ;;  %v471_v34 = vadd.f32 %v466_v2, %v450_v30 }
 0x17d   :  { %v338_v39 = vmax.f32 %v334_v33, 0.0  ;;  %v475_v40 = vmax.f32 %v471_v34, 0.0 }
 0x17f   :  { %v342_v44 = vpack.c.bf16 %v338_v39, %v337_v37  ;;  %v478_v45 = vpack.c.bf16 %v475_v40, %v474_v38 }
 0x181   :  { %365 = vmatpush.bf16.msra.mxu0 %v342_v44  ;;  %492 = vmatpush.bf16.msrb.mxu3 %v478_v45 }
 0x185   :  { %366 = vmatpush.bf16.msra.mxu0 %v341_v49  ;;  %493 = vmatpush.bf16.msrb.mxu3 %v477_v51 }
 0x188   :  { %608 = vmatmul.msk.bf16.vlgmr.msra.gmra.mxu0 %vm77_vm0, %v639_v52  ;;  %629 = vmatmul.msk.bf16.vlgmr.msrb.gmra.mxu3 %vm77_vm0, %v476_v53 }
 0x205   :  { %v368_v54 = vpop.f32.mrf.mxu0 }
 0x206   :  { %v369_v57 = vadd.f32 %v368_v54, %v345_v55 }
 0x208   :  { %v500_v62 = vsub.f32 %v846_v48, %v369_v57 }
 0x20a   :  { %v503_v1 = vmul.f32 %v500_v62, %v500_v62 }
 0x20b   :  { %v495_v58 = vpop.f32.mrf.mxu3 }
 0x20c   :  { %v496_v60 = vadd.f32 %v495_v58, %v481_v56 }
 0x20d   :  { %v370_v61 = vpop.f32.mrf.mxu0 }
 0x20e   :  { %680 = vtanh.f32 %v496_v60  ;;  %v371_v63 = vadd.f32 %v370_v61, %v349_v59 }
 0x210   :  { %v501_v0 = vsub.f32 %v849_v50, %v371_v63 }
 0x212   :  { %v504_v2 = vmul.f32 %v501_v0, %v501_v0 }
 0x213   :  { %v497_v4 = vpop.f32.mrf.mxu3 }
 0x214   :  { %v681_v5 = vpop.eup %680  ;;  %v505_v6 = vadd.f32 %v504_v2, %v503_v1 }
 0x215   :  { %v502_v7 = vsub.f32 %v817_v41, %v681_v5 }
 0x216   :  { %v506_v8 = vrot.slane %v505_v6, 4 }
 0x217   :  { %v524_v10 = vmul.f32 %v502_v7, %v502_v7 }
 0x218   :  { %v507_v11 = vadd.f32 %v506_v8, %v505_v6 }
 0x219   :  { %v525_v12 = vrot.slane %v524_v10, 4 }
 0x21a   :  { %v508_v13 = vrot.slane %v507_v11, 2 }
 0x21b   :  { %v526_v14 = vadd.f32 %v525_v12, %v524_v10 }
 0x21c   :  { %v509_v15 = vadd.f32 %v508_v13, %v507_v11 }
 0x21d   :  { %v527_v16 = vrot.slane %v526_v14, 2 }
 0x21e   :  { %v510_v48 = vrot.slane %v509_v15, 1 }
 0x21f   :  { %v528_v17 = vadd.f32 %v527_v16, %v526_v14 }
 0x220   :  { %v511_v18 = vadd.f32 %v510_v48, %v509_v15 }
 0x221   :  { %v529_v19 = vrot.slane %v528_v17, 1 }
 0x222   :  { %682 = vrsqrt.f32 %v511_v18  ;;  %vm519_vm11 = vcmp.eq.f32.partialorder %v511_v18, inf  ;;  %v522_v32 = vand.u32 2147483648, %v511_v18  ;;  %vm521_vm14 = vcmp.eq.f32.partialorder %v511_v18, 0.0 }
 0x223   :  { %v530_v50 = vadd.f32 %v529_v19, %v528_v17 }
 0x225   :  { %684 = vrsqrt.f32 %v530_v50  ;;  %vm538_vm12 = vcmp.eq.f32.partialorder %v530_v50, inf  ;;  %v541_v33 = vand.u32 2147483648, %v530_v50  ;;  %vm540_vm15 = vcmp.eq.f32.partialorder %v530_v50, 0.0 }
 0x228   :  { %v683_v20 = vpop.eup %682 }
 0x229   :  { %v513_v21 = vmul.f32 %v683_v20, %v511_v18 }
 0x22b   :  { %v685_v22 = vpop.eup %684  ;;  %v514_v23 = vmul.f32 %v683_v20, %v513_v21 }
 0x22c   :  { %v532_v41 = vmul.f32 %v685_v22, %v530_v50 }
 0x22d   :  { %v515_v24 = vmul.f32 0.5, %v514_v23 }
 0x22e   :  { %v533_v25 = vmul.f32 %v685_v22, %v532_v41 }
 0x22f   :  { %v516_v3 = vsub.f32 1.5, %v515_v24 }
 0x230   :  { %v534_v26 = vmul.f32 0.5, %v533_v25 }
 0x231   :  { %v517_v27 = vmul.f32 %v683_v20, %v516_v3 }
 0x232   :  { %v535_v28 = vsub.f32 1.5, %v534_v26 }
 0x233   :  { %v518_v9 = vmul.f32 %v517_v27, %v511_v18 }
 0x234   :  { %v536_v29 = vmul.f32 %v685_v22, %v535_v28 }
 0x235   :  { %v520_v30 = vsel %vm519_vm11, %v511_v18, %v518_v9 }
 0x236   :  { %v537_v31 = vmul.f32 %v536_v29, %v530_v50  ;;  %v523_v35 = vsel %vm521_vm14, %v522_v32, %v520_v30 }
 0x238   :  { %v539_v34 = vsel %vm538_vm12, %v530_v50, %v537_v31 }
 0x239   :  { %v542_v36 = vsel %vm540_vm15, %v541_v33, %v539_v34 }
 0x23a   :  { %v544_v37 = vsel %vm543_vm13, %v523_v35, %v542_v36 }
 0x23b   :  { %545 = vst [vmem:[#allocation2] sm:$0x3] %v544_v37 }
 0x23c   :  { %556 = dma.vmem_to_hbm [thread:$0]  %s552_s9, 32, %s554_s2, [#allocation3]  }
 0x23d   :  { %710 = dma.done.wait [#allocation3], 32  }
 0x23e   :  { %711 = vsyncadd [#allocation3], 4294967264 }
 0x23f   :  { %561 = vsyncpa [#allocation3], 1 }

</bundles_post_ra>
